<compile_context>
chip_gen: v7x
topology: tpu7x:2x2x1
jax: 0.10.0
libtpu: 0.0.40
codegen_flags: <defaults>
</compile_context>

<pallas_src>
import functools

import jax
import jax.numpy as jnp
from jax.experimental import pallas as pl
from jax.experimental.pallas import tpu as pltpu

# Module hyperparameters (the PyTorch script leaves these as globals; these are
# the natural MNIST-MLP choices at small scale).
INPUT_SIZE = 784     # 1x28x28 flattened
NODE1 = 64
NODE2 = 32
OUTPUT_SIZE = 10

DEFAULT_TB = 2048    # max rows per grid step (multiple of 16 for bf16 packing)


def _round_up(n, m):
    return ((n + m - 1) // m) * m


def _choose_tiling(batch, max_tb):
    """Pick (tile_rows, padded_batch, n_tiles).

    - pad only to a multiple of 16 rows (sublane packing), never to a full
      max_tb tile, so pad waste is bounded by 16 * n_tiles rows.
    - use at least 2 tiles whenever the batch allows so the 'parallel' grid
      axis can be split across TensorCores (v7x megacore).
    """
    padded16 = _round_up(max(batch, 1), 16)
    n_tiles = max(pl.cdiv(padded16, max_tb), 2 if padded16 >= 32 else 1)
    tb = _round_up(pl.cdiv(padded16, n_tiles), 16)
    padded = n_tiles * tb
    return tb, padded, n_tiles


def mlp_kernel(x_ref, w1_ref, b1_ref, w2_ref, b2_ref, w3_ref, b3_ref, o_ref):
    """fc1 -> relu -> fc2 -> relu -> fc3 -> log_softmax(dim=1) on one batch tile."""
    x = x_ref[...]
    if x.dtype != jnp.bfloat16:
        # Downcast only as the matmul operand (no f32 tile copy, bf16 MXU path).
        x = x.astype(jnp.bfloat16)

    # All matmuls: bf16 operands, f32 accumulation.  Bias/relu/softmax math f32.
    h1 = jnp.dot(x, w1_ref[...], preferred_element_type=jnp.float32) + b1_ref[...]
    h1 = jnp.maximum(h1, 0.0)

    h2 = jnp.dot(h1.astype(jnp.bfloat16), w2_ref[...],
                 preferred_element_type=jnp.float32) + b2_ref[...]
    h2 = jnp.maximum(h2, 0.0)

    logits = jnp.dot(h2.astype(jnp.bfloat16), w3_ref[...],
                     preferred_element_type=jnp.float32) + b3_ref[...]

    # numerically-stable log_softmax along axis=1 (the class axis)
    m = jnp.max(logits, axis=1, keepdims=True)
    shifted = logits - m
    lse = jnp.log(jnp.sum(jnp.exp(shifted), axis=1, keepdims=True))
    o_ref[...] = (shifted - lse).astype(o_ref.dtype)


@functools.partial(jax.jit, static_argnames=("max_tb",))
def mlp_forward(x, w1, b1, w2, b2, w3, b3, *, max_tb=DEFAULT_TB):
    """x: any shape with prod(trailing dims) == INPUT_SIZE (e.g. NCHW images).

    x is streamed to the kernel in its native dtype (f32 or bf16); no extra
    HBM pass is spent re-materializing it in another dtype.
    """
    x2d = x.reshape(-1, INPUT_SIZE)                 # x.view(-1, input_size)
    batch = x2d.shape[0]

    tb, padded, n_tiles = _choose_tiling(batch, max_tb)
    if padded != batch:
        x2d = jnp.pad(x2d, ((0, padded - batch), (0, 0)))

    # Weights to bf16 (tiny, VMEM-resident); biases stay f32 for the f32 adds.
    w1b = w1.astype(jnp.bfloat16)
    w2b = w2.astype(jnp.bfloat16)
    w3b = w3.astype(jnp.bfloat16)

    # Weights/biases: constant index_map -> fetched once, VMEM-resident.
    resident = lambda shape: pl.BlockSpec(shape, lambda i: (0, 0))

    out = pl.pallas_call(
        mlp_kernel,
        out_shape=jax.ShapeDtypeStruct((padded, OUTPUT_SIZE), jnp.float32),
        grid_spec=pltpu.PrefetchScalarGridSpec(
            num_scalar_prefetch=0,
            grid=(n_tiles,),
            in_specs=[
                pl.BlockSpec((tb, INPUT_SIZE), lambda i: (i, 0)),   # x (pipelined)
                resident((INPUT_SIZE, NODE1)),                      # w1 (bf16)
                resident((1, NODE1)),                               # b1 (f32)
                resident((NODE1, NODE2)),                           # w2 (bf16)
                resident((1, NODE2)),                               # b2 (f32)
                resident((NODE2, OUTPUT_SIZE)),                     # w3 (bf16)
                resident((1, OUTPUT_SIZE)),                         # b3 (f32)
            ],
            out_specs=pl.BlockSpec((tb, OUTPUT_SIZE), lambda i: (i, 0)),
        ),
        compiler_params=pltpu.CompilerParams(
            dimension_semantics=("parallel",),        # megacore / v7x 2-TC sharding
            vmem_limit_bytes=32 * 1024 * 1024,        # lift v5e's 16 MiB default
        ),
    )(x2d, w1b, b1, w2b, b2, w3b, b3)

    return out[:batch]


def init_linear(key, fan_in, fan_out):
    """Deterministic init mimicking nn.Linear: U(-1/sqrt(fan_in), 1/sqrt(fan_in))."""
    kw, kb = jax.random.split(key)
    bound = 1.0 / (fan_in ** 0.5)
    w = jax.random.uniform(kw, (fan_in, fan_out), jnp.float32, -bound, bound)
    b = jax.random.uniform(kb, (1, fan_out), jnp.float32, -bound, bound)
    return w, b


def reference_forward(x, w1, b1, w2, b2, w3, b3):
    """Pure-JAX reference using the same bf16-operand / f32-accumulate scheme
    as the kernel (bf16 quantization slightly changes numerics vs a pure-f32
    PyTorch forward; documented trade-off for the memory-bound kernel)."""
    x2d = x.reshape(-1, INPUT_SIZE).astype(jnp.bfloat16)
    w1b, w2b, w3b = (w.astype(jnp.bfloat16) for w in (w1, w2, w3))
    h1 = jax.nn.relu(jnp.dot(x2d, w1b, preferred_element_type=jnp.float32) + b1)
    h2 = jax.nn.relu(jnp.dot(h1.astype(jnp.bfloat16), w2b,
                             preferred_element_type=jnp.float32) + b2)
    logits = jnp.dot(h2.astype(jnp.bfloat16), w3b,
                     preferred_element_type=jnp.float32) + b3
    return jax.nn.log_softmax(logits, axis=1)


if __name__ == "__main__":
    key = jax.random.PRNGKey(0)
    kx, kx2, k1, k2, k3 = jax.random.split(key, 5)

    w1, b1 = init_linear(k1, INPUT_SIZE, NODE1)
    w2, b2 = init_linear(k2, NODE1, NODE2)
    w3, b3 = init_linear(k3, NODE2, OUTPUT_SIZE)

    # Case 1: small f32 NCHW MNIST-style batch (matches the PyTorch module's
    # native input); flattened inside the wrapper (x.view(-1, 784)).
    batch = 8
    x = jax.random.normal(kx, (batch, 1, 28, 28), jnp.float32)
    out = jax.block_until_ready(mlp_forward(x, w1, b1, w2, b2, w3, b3))
    ref = reference_forward(x, w1, b1, w2, b2, w3, b3)
    assert out.shape == (batch, OUTPUT_SIZE)
    assert jnp.allclose(out, ref, atol=1e-3, rtol=1e-3), "mismatch vs reference (small batch)"

    # Case 2: larger batch, bf16 x already in HBM (conversion done upstream),
    # small max_tb to exercise the multi-tile pipelined path + 16-row padding.
    batch2 = 200
    x2 = jax.random.normal(kx2, (batch2, 1, 28, 28), jnp.float32).astype(jnp.bfloat16)
    out2 = jax.block_until_ready(mlp_forward(x2, w1, b1, w2, b2, w3, b3, max_tb=64))
    ref2 = reference_forward(x2, w1, b1, w2, b2, w3, b3)
    assert out2.shape == (batch2, OUTPUT_SIZE)
    assert jnp.allclose(out2, ref2, atol=1e-3, rtol=1e-3), "mismatch vs reference (tiled batch)"

    print("KERNEL_OK")
</pallas_src>

<mosaic_0001>
module attributes {stable_mosaic.version = 11 : i64} {
  func.func @mlp_kernel(%arg0: i32, %arg1: memref<16x784xf32, #tpu.memory_space<vmem>>, %arg2: memref<784x64xbf16, #tpu.memory_space<vmem>>, %arg3: memref<1x64xf32, #tpu.memory_space<vmem>>, %arg4: memref<64x32xbf16, #tpu.memory_space<vmem>>, %arg5: memref<1x32xf32, #tpu.memory_space<vmem>>, %arg6: memref<32x10xbf16, #tpu.memory_space<vmem>>, %arg7: memref<1x10xf32, #tpu.memory_space<vmem>>, %arg8: memref<16x10xf32, #tpu.memory_space<vmem>>) attributes {dimension_semantics = [#tpu.dimension_semantics<parallel>], iteration_bounds = array<i64: 1>, scalar_prefetch = 0 : i64, scratch_operands = 0 : i64, tpu.core_type = #tpu.core_type<tc>, window_params = [{transform_indices = @transform_0, window_bounds = array<i64: 16, 784>}, {pipeline_mode = #tpu.pipeline_mode<synchronous>, transform_indices = @transform_1, window_bounds = array<i64: 784, 64>}, {pipeline_mode = #tpu.pipeline_mode<synchronous>, transform_indices = @transform_2, window_bounds = array<i64: 1, 64>}, {pipeline_mode = #tpu.pipeline_mode<synchronous>, transform_indices = @transform_3, window_bounds = array<i64: 64, 32>}, {pipeline_mode = #tpu.pipeline_mode<synchronous>, transform_indices = @transform_4, window_bounds = array<i64: 1, 32>}, {pipeline_mode = #tpu.pipeline_mode<synchronous>, transform_indices = @transform_5, window_bounds = array<i64: 32, 10>}, {pipeline_mode = #tpu.pipeline_mode<synchronous>, transform_indices = @transform_6, window_bounds = array<i64: 1, 10>}, {transform_indices = @transform_7, window_bounds = array<i64: 16, 10>}]} {
    %c0 = arith.constant 0 : index
    %c0_0 = arith.constant 0 : index
    %0 = vector.load %arg1[%c0, %c0_0] : memref<16x784xf32, #tpu.memory_space<vmem>>, vector<16x784xf32>
    %1 = arith.truncf %0 : vector<16x784xf32> to vector<16x784xbf16>
    %c0_1 = arith.constant 0 : index
    %c0_2 = arith.constant 0 : index
    %2 = vector.load %arg2[%c0_1, %c0_2] : memref<784x64xbf16, #tpu.memory_space<vmem>>, vector<784x64xbf16>
    %cst = arith.constant dense<0.000000e+00> : vector<16x64xf32>
    %3 = tpu.matmul %1, %2, %cst {dimension_numbers = #tpu.dot_dimension_numbers<[1], [0], [0], [1], [0, 0, 1, 1], [], []>} : vector<16x784xbf16>, vector<784x64xbf16>, vector<16x64xf32> -> vector<16x64xf32>
    %c0_3 = arith.constant 0 : index
    %c0_4 = arith.constant 0 : index
    %4 = vector.load %arg3[%c0_3, %c0_4] : memref<1x64xf32, #tpu.memory_space<vmem>>, vector<1x64xf32>
    %5 = vector.broadcast %4 : vector<1x64xf32> to vector<16x64xf32>
    %6 = arith.addf %3, %5 : vector<16x64xf32>
    %cst_5 = arith.constant 0.000000e+00 : f32
    %7 = vector.broadcast %cst_5 : f32 to vector<16x64xf32>
    %8 = arith.maximumf %6, %7 : vector<16x64xf32>
    %9 = arith.truncf %8 : vector<16x64xf32> to vector<16x64xbf16>
    %c0_6 = arith.constant 0 : index
    %c0_7 = arith.constant 0 : index
    %10 = vector.load %arg4[%c0_6, %c0_7] : memref<64x32xbf16, #tpu.memory_space<vmem>>, vector<64x32xbf16>
    %cst_8 = arith.constant dense<0.000000e+00> : vector<16x32xf32>
    %11 = tpu.matmul %9, %10, %cst_8 {dimension_numbers = #tpu.dot_dimension_numbers<[1], [0], [0], [1], [0, 0, 1, 1], [], []>} : vector<16x64xbf16>, vector<64x32xbf16>, vector<16x32xf32> -> vector<16x32xf32>
    %c0_9 = arith.constant 0 : index
    %c0_10 = arith.constant 0 : index
    %12 = vector.load %arg5[%c0_9, %c0_10] : memref<1x32xf32, #tpu.memory_space<vmem>>, vector<1x32xf32>
    %13 = vector.broadcast %12 : vector<1x32xf32> to vector<16x32xf32>
    %14 = arith.addf %11, %13 : vector<16x32xf32>
    %cst_11 = arith.constant 0.000000e+00 : f32
    %15 = vector.broadcast %cst_11 : f32 to vector<16x32xf32>
    %16 = arith.maximumf %14, %15 : vector<16x32xf32>
    %17 = arith.truncf %16 : vector<16x32xf32> to vector<16x32xbf16>
    %c0_12 = arith.constant 0 : index
    %c0_13 = arith.constant 0 : index
    %18 = vector.load %arg6[%c0_12, %c0_13] : memref<32x10xbf16, #tpu.memory_space<vmem>>, vector<32x10xbf16>
    %cst_14 = arith.constant dense<0.000000e+00> : vector<16x10xf32>
    %19 = tpu.matmul %17, %18, %cst_14 {dimension_numbers = #tpu.dot_dimension_numbers<[1], [0], [0], [1], [0, 0, 1, 1], [], []>} : vector<16x32xbf16>, vector<32x10xbf16>, vector<16x10xf32> -> vector<16x10xf32>
    %c0_15 = arith.constant 0 : index
    %c0_16 = arith.constant 0 : index
    %20 = vector.load %arg7[%c0_15, %c0_16] : memref<1x10xf32, #tpu.memory_space<vmem>>, vector<1x10xf32>
    %21 = vector.broadcast %20 : vector<1x10xf32> to vector<16x10xf32>
    %22 = arith.addf %19, %21 : vector<16x10xf32>
    %cst_17 = arith.constant dense<0xFF800000> : vector<16xf32>
    %23 = vector.multi_reduction <maximumf>, %22, %cst_17 [1] : vector<16x10xf32> to vector<16xf32>
    %24 = vector.shape_cast %23 : vector<16xf32> to vector<16x1xf32>
    %25 = vector.broadcast %24 : vector<16x1xf32> to vector<16x10xf32>
    %26 = arith.subf %22, %25 : vector<16x10xf32>
    %27 = math.exp %26 : vector<16x10xf32>
    %cst_18 = arith.constant dense<0.000000e+00> : vector<16xf32>
    %28 = vector.multi_reduction <add>, %27, %cst_18 [1] : vector<16x10xf32> to vector<16xf32>
    %29 = vector.shape_cast %28 : vector<16xf32> to vector<16x1xf32>
    %30 = math.log %29 : vector<16x1xf32>
    %31 = vector.broadcast %30 : vector<16x1xf32> to vector<16x10xf32>
    %32 = arith.subf %26, %31 : vector<16x10xf32>
    %c0_19 = arith.constant 0 : index
    %c0_20 = arith.constant 0 : index
    %33 = vector.load %arg8[%c0_19, %c0_20] : memref<16x10xf32, #tpu.memory_space<vmem>>, vector<16x10xf32>
    tpu.vector_store %arg8[%c0_19, %c0_20], %32 {strides = array<i32>} : memref<16x10xf32, #tpu.memory_space<vmem>>, vector<16x10xf32>,
    return
  }
  func.func @transform_0(%arg0: i32) -> (i32, i32) {
    %c0_i32 = arith.constant 0 : i32
    %c0_i32_0 = arith.constant 0 : i32
    return %arg0, %c0_i32 : i32, i32
  }
  func.func @transform_1(%arg0: i32) -> (i32, i32) {
    %c0_i32 = arith.constant 0 : i32
    %c0_i32_0 = arith.constant 0 : i32
    %c0_i32_1 = arith.constant 0 : i32
    return %c0_i32, %c0_i32_0 : i32, i32
  }
  func.func @transform_2(%arg0: i32) -> (i32, i32) {
    %c0_i32 = arith.constant 0 : i32
    %c0_i32_0 = arith.constant 0 : i32
    %c0_i32_1 = arith.constant 0 : i32
    return %c0_i32, %c0_i32_0 : i32, i32
  }
  func.func @transform_3(%arg0: i32) -> (i32, i32) {
    %c0_i32 = arith.constant 0 : i32
    %c0_i32_0 = arith.constant 0 : i32
    %c0_i32_1 = arith.constant 0 : i32
    return %c0_i32, %c0_i32_0 : i32, i32
  }
  func.func @transform_4(%arg0: i32) -> (i32, i32) {
    %c0_i32 = arith.constant 0 : i32
    %c0_i32_0 = arith.constant 0 : i32
    %c0_i32_1 = arith.constant 0 : i32
    return %c0_i32, %c0_i32_0 : i32, i32
  }
  func.func @transform_5(%arg0: i32) -> (i32, i32) {
    %c0_i32 = arith.constant 0 : i32
    %c0_i32_0 = arith.constant 0 : i32
    %c0_i32_1 = arith.constant 0 : i32
    return %c0_i32, %c0_i32_0 : i32, i32
  }
  func.func @transform_6(%arg0: i32) -> (i32, i32) {
    %c0_i32 = arith.constant 0 : i32
    %c0_i32_0 = arith.constant 0 : i32
    %c0_i32_1 = arith.constant 0 : i32
    return %c0_i32, %c0_i32_0 : i32, i32
  }
  func.func @transform_7(%arg0: i32) -> (i32, i32) {
    %c0_i32 = arith.constant 0 : i32
    %c0_i32_0 = arith.constant 0 : i32
    return %arg0, %c0_i32 : i32, i32
  }
}

</mosaic_0001>

<bundles_post_ra>
// kernel: mlp_forward.1
= control target key start
LH: loop header
LB: loop body
LE: loop exit
PB: predicated region body
PF: predicated region fallthrough
CT: control target
= control target key end

     0   :  { %v1032_v43 = vmov 0.0   ;;  %vm1033_vm0 = vmmov 0   ;;  %vm447_vm1 = vcmask 130048   ;;  %vm657_vm2 = vcmask 523264   ;;  %s1315_s1 = inlined_call_operand.vmem [shape: bf16[784,64], index: 1, kind: input, shape index: {}]   ;;  %s1316_s0 = inlined_call_operand.vmem [shape: f32[16,784], index: 0, kind: input, shape index: {}]   ;;  %s1317_s3 = inlined_call_operand.vmem [shape: bf16[64,32], index: 3, kind: input, shape index: {}]   ;;  %s1318_s2 = inlined_call_operand.vmem [shape: f32[1,64], index: 2, kind: input, shape index: {}]   ;;  %s1319_s5 = inlined_call_operand.vmem [shape: bf16[32,10], index: 5, kind: input, shape index: {}]   ;;  %s1320_s4 = inlined_call_operand.vmem [shape: f32[1,32], index: 4, kind: input, shape index: {}]   ;;  %s1321_s6 = inlined_call_operand.vmem [shape: f32[1,10], index: 6, kind: input, shape index: {}]   ;;  %s1322_s7 = inlined_call_operand.vmem [shape: f32[16,10], index: 7, kind: output, shape index: {}]  }
   0x1   :  { %v969_v0 = vld [vmem:[%s1315_s1 + $0x40] sm:$0xff]   ;;  %v973_v4 = vld [vmem:[%s1315_s1 + $0x48] sm:$0xff]   ;;  %v977_v8 = vld [vmem:[%s1315_s1 + $0x50] sm:$0xff]   ;;  %vm728_vm3 = vcmask 261120   ;;  %vm773_vm4 = vcmask 80896  }
   0x2   :  { %v970_v1 = vld [vmem:[%s1315_s1] sm:$0xff]   ;;  %865 = vmatprep.subr.bf16.mxu0 %v969_v0  ;;  %v974_v5 = vld [vmem:[%s1315_s1 + $0x8] sm:$0xff]   ;;  %v978_v9 = vld [vmem:[%s1315_s1 + $0x10] sm:$0xff]  }
   0x3   :  { %v971_v2 = vld [vmem:[%s1315_s1 + $0xc0] sm:$0xff]   ;;  %866 = vmatpush3.bf16.msra.mxu0 %v970_v1  ;;  %v975_v6 = vld [vmem:[%s1315_s1 + $0xc8] sm:$0xff]   ;;  %v979_v10 = vld [vmem:[%s1315_s1 + $0xd0] sm:$0xff]  }
   0x4   :  { %v972_v3 = vld [vmem:[%s1315_s1 + $0x80] sm:$0xff]   ;;  %887 = vmatprep.subr.bf16.mxu1 %v971_v2  ;;  %867 = vmatprep.subr.bf16.mxu0 %v973_v4  ;;  %v976_v7 = vld [vmem:[%s1315_s1 + $0x88] sm:$0xff]   ;;  %v980_v11 = vld [vmem:[%s1315_s1 + $0x90] sm:$0xff]  }
   0x5   :  { %888 = vmatpush3.bf16.msra.mxu1 %v972_v3  ;;  %v981_v12 = vld [vmem:[%s1315_s1 + $0x58] sm:$0xff]   ;;  %v985_v16 = vld [vmem:[%s1315_s1 + $0x60] sm:$0xff]   ;;  %v989_v20 = vld [vmem:[%s1315_s1 + $0x68] sm:$0xff]  }
   0x6   :  { %889 = vmatprep.subr.bf16.mxu1 %v975_v6  ;;  %v982_v13 = vld [vmem:[%s1315_s1 + $0x18] sm:$0xff]   ;;  %v986_v17 = vld [vmem:[%s1315_s1 + $0x20] sm:$0xff]   ;;  %v990_v21 = vld [vmem:[%s1315_s1 + $0x28] sm:$0xff]  }
   0x7   :  { %868 = vmatpush3.bf16.msra.mxu0 %v974_v5  ;;  %v983_v14 = vld [vmem:[%s1315_s1 + $0xd8] sm:$0xff]   ;;  %v987_v18 = vld [vmem:[%s1315_s1 + $0xe0] sm:$0xff]   ;;  %v991_v22 = vld [vmem:[%s1315_s1 + $0xe8] sm:$0xff]  }
   0x8   :  { %869 = vmatprep.subr.bf16.mxu0 %v977_v8  ;;  %v984_v15 = vld [vmem:[%s1315_s1 + $0x98] sm:$0xff]   ;;  %v988_v19 = vld [vmem:[%s1315_s1 + $0xa0] sm:$0xff]   ;;  %v992_v23 = vld [vmem:[%s1315_s1 + $0xa8] sm:$0xff]  }
   0x9   :  { %890 = vmatpush3.bf16.msra.mxu1 %v976_v7  ;;  %v993_v24 = vld [vmem:[%s1315_s1 + $0x70] sm:$0xff]   ;;  %v997_v28 = vld [vmem:[%s1315_s1 + $0x78] sm:$0xff]   ;;  %v28_v31 = vld [vmem:[%s1316_s0 + $0x8] sm:$0xff] }
   0xa   :  { %891 = vmatprep.subr.bf16.mxu1 %v979_v10  ;;  %v994_v25 = vld [vmem:[%s1315_s1 + $0x30] sm:$0xff]   ;;  %v998_v29 = vld [vmem:[%s1315_s1 + $0x38] sm:$0xff]   ;;  %v35_v32 = vld [vmem:[%s1316_s0 + $0x40] sm:$0xff] }
   0xb   :  { %870 = vmatpush3.bf16.msra.mxu0 %v978_v9  ;;  %v995_v26 = vld [vmem:[%s1315_s1 + $0xf0] sm:$0xff]   ;;  %v999_v30 = vld [vmem:[%s1315_s1 + $0xf8] sm:$0xff]   ;;  %v42_v33 = vpack.c.bf16 %v35_v32, %v28_v31  ;;  %v27_v35 = vld [vmem:[%s1316_s0] sm:$0xff] }
   0xc   :  { %871 = vmatprep.subr.bf16.mxu0 %v981_v12  ;;  %v996_v27 = vld [vmem:[%s1315_s1 + $0xb0] sm:$0xff]   ;;  %v1000_v34 = vld [vmem:[%s1315_s1 + $0xb8] sm:$0xff]   ;;  %v1001_v38 = vld [vmem:[%s1315_s1 + $0x140] sm:$0xff]  }
   0xd   :  { %892 = vmatpush3.bf16.msra.mxu1 %v980_v11  ;;  %v34_v36 = vld [vmem:[%s1316_s0 + $0x38] sm:$0xff]  ;;  %483 = vmatprep.mubr.bf16.mxu0 %v42_v33  ;;  %v37_v40 = vld [vmem:[%s1316_s0 + $0x50] sm:$0xff]  ;;  %v1002_v42 = vld [vmem:[%s1315_s1 + $0x100] sm:$0xff]  }
   0xe   :  { %893 = vmatprep.subr.bf16.mxu1 %v983_v14  ;;  %v41_v37 = vpack.c.bf16 %v34_v36, %v27_v35  ;;  %v30_v39 = vld [vmem:[%s1316_s0 + $0x18] sm:$0xff]  ;;  %v29_v44 = vld [vmem:[%s1316_s0 + $0x10] sm:$0xff]  ;;  %v36_v45 = vld [vmem:[%s1316_s0 + $0x48] sm:$0xff] }
   0xf   :  { %872 = vmatpush3.bf16.msra.mxu0 %v982_v13  ;;  %v44_v41 = vpack.c.bf16 %v37_v40, %v30_v39  ;;  %v43_v46 = vpack.c.bf16 %v36_v45, %v29_v44  ;;  %v1003_v47 = vld [vmem:[%s1315_s1 + $0x148] sm:$0xff]   ;;  %v1005_v49 = vld [vmem:[%s1315_s1 + $0x150] sm:$0xff]   ;;  %v1007_v51 = vld [vmem:[%s1315_s1 + $0x158] sm:$0xff]  }
  0x10   :  { %873 = vmatprep.subr.bf16.mxu0 %v985_v16  ;;  %v1004_v48 = vld [vmem:[%s1315_s1 + $0x108] sm:$0xff]   ;;  %v1006_v50 = vld [vmem:[%s1315_s1 + $0x110] sm:$0xff]   ;;  %v1008_v52 = vld [vmem:[%s1315_s1 + $0x118] sm:$0xff]  }
  0x11   :  { %894 = vmatpush3.bf16.msra.mxu1 %v984_v15  ;;  %524 = vmatprep.mubr.bf16.mxu1 %v44_v41  ;;  %v1009_v53 = vld [vmem:[%s1315_s1 + $0x160] sm:$0xff]   ;;  %v1011_v55 = vld [vmem:[%s1315_s1 + $0x168] sm:$0xff]   ;;  %v33_v61 = vld [vmem:[%s1316_s0 + $0x30] sm:$0xff] }
  0x12   :  { %895 = vmatprep.subr.bf16.mxu1 %v987_v18  ;;  %v1010_v54 = vld [vmem:[%s1315_s1 + $0x120] sm:$0xff]   ;;  %v32_v57 = vld [vmem:[%s1316_s0 + $0x28] sm:$0xff]  ;;  %v1013_v63 = vld [vmem:[%s1315_s1 + $0x170] sm:$0xff]  }
  0x13   :  { %874 = vmatpush3.bf16.msra.mxu0 %v986_v17  ;;  %v1017_v56 = vld [vmem:[%s1315_s1 + $0x180] sm:$0xff]   ;;  %v1012_v59 = vld [vmem:[%s1315_s1 + $0x128] sm:$0xff]   ;;  %v1014_v1 = vld [vmem:[%s1315_s1 + $0x130] sm:$0xff]  }
  0x14   :  { %875 = vmatprep.subr.bf16.mxu0 %v989_v20  ;;  %v39_v58 = vld [vmem:[%s1316_s0 + $0x60] sm:$0xff]  ;;  %v40_v62 = vld [vmem:[%s1316_s0 + $0x68] sm:$0xff]  ;;  %v1015_v2 = vld [vmem:[%s1315_s1 + $0x178] sm:$0xff]  }
  0x15   :  { %896 = vmatpush3.bf16.msra.mxu1 %v988_v19  ;;  %v46_v60 = vpack.c.bf16 %v39_v58, %v32_v57  ;;  %v47_v0 = vpack.c.bf16 %v40_v62, %v33_v61  ;;  %v1016_v3 = vld [vmem:[%s1315_s1 + $0x138] sm:$0xff]   ;;  %v31_v4 = vld [vmem:[%s1316_s0 + $0x20] sm:$0xff]  ;;  %v1019_v8 = vld [vmem:[%s1317_s3 + $0x8] sm:$0xff]  }
  0x16   :  { %897 = vmatprep.subr.bf16.mxu1 %v991_v22  ;;  %v38_v5 = vld [vmem:[%s1316_s0 + $0x58] sm:$0xff]  ;;  %v1018_v7 = vld [vmem:[%s1317_s3] sm:$0xff]   ;;  %v1020_v9 = vld [vmem:[%s1317_s3 + $0x10] sm:$0xff]  }
  0x17   :  { %876 = vmatpush3.bf16.msra.mxu0 %v990_v21  ;;  %v45_v6 = vpack.c.bf16 %v38_v5, %v31_v4  ;;  %v1021_v10 = vld [vmem:[%s1317_s3 + $0x18] sm:$0xff]   ;;  %v804_v12 = vld [vmem:[%s1318_s2] ss:$0 sm:$0xff] }
  0x18   :  { %877 = vmatprep.subr.bf16.mxu0 %v993_v24 }
  0x19   :  { %898 = vmatpush3.bf16.msra.mxu1 %v992_v23 }
  0x1a   :  { %899 = vmatprep.subr.bf16.mxu1 %v995_v26 }
  0x1b   :  { %878 = vmatpush3.bf16.msra.mxu0 %v994_v25 }
  0x1c   :  { %879 = vmatprep.subr.bf16.mxu0 %v997_v28 }
  0x1d   :  { %900 = vmatpush3.bf16.msra.mxu1 %v996_v27 }
  0x1e   :  { %901 = vmatprep.subr.bf16.mxu1 %v999_v30 }
  0x1f   :  { %880 = vmatpush3.bf16.msra.mxu0 %v998_v29 }
  0x20   :  { %909 = vmatprep.subr.bf16.mxu0 %v1001_v38 }
  0x21   :  { %902 = vmatpush3.bf16.msra.mxu1 %v1000_v34 }
  0x22   :  { %941 = vmatprep.subr.bf16.mxu1 %v1032_v43  ;;  %484 = vmatmul.mubr.bf16.vlgmr.msra.gmra.mrb[0].mxu0 %v41_v37 }
  0x23   :  { %910 = vmatpush3.bf16.msra.mxu0 %v1002_v42  ;;  %565 = vmatprep.mubr.bf16.mxu0 %v46_v60 }
  0x24   :  { %525 = vmatmul.mubr.bf16.vlgmr.msra.gmra.mrb[0].mxu1 %v43_v46  ;;  %911 = vmatprep.subr.bf16.mxu0 %v1003_v47  ;;  %v1022_v46 = vld [vmem:[%s1319_s5] sm:$0xff]   ;;  %v1023_v47 = vld [vmem:[%s1319_s5 + $0x8] sm:$0xff]  }
  0x25   :  { %943 = vmatprep.mubr.msk.bf16.mxu1 %vm1033_vm0, %v1032_v43  ;;  %942 = vmatpush3.bf16.msra.mxu1 %v1017_v56 }
  0x26   :  { %947 = vmatprep.subr.bf16.mxu1 %v1032_v43 }
  0x27   :  { %912 = vmatpush3.bf16.msra.mxu0 %v1004_v48  ;;  %v855_v48 = vld [vmem:[%s1320_s4] ss:$0 sm:$0xff] }
  0x28   :  { %913 = vmatprep.subr.bf16.mxu0 %v1005_v49 }
  0x2b   :  { %914 = vmatpush3.bf16.msra.mxu0 %v1006_v50 }
  0x2c   :  { %915 = vmatprep.subr.bf16.mxu0 %v1007_v51  ;;  %944 = vmatmul.mubr.msk.bf16.vlgmr.msra.gmra.mrb[4].mxu1 %vm447_vm1, %v47_v0 }
  0x2d   :  { %955 = vmatprep.mubr.msk.bf16.mxu1 %vm1033_vm0, %v1032_v43  ;;  %948 = vmatpush3.bf16.msra.mxu1 %v1018_v7 }
  0x2e   :  { %949 = vmatprep.subr.bf16.mxu1 %v1032_v43 }
  0x2f   :  { %916 = vmatpush3.bf16.msra.mxu0 %v1008_v52 }
  0x30   :  { %917 = vmatprep.subr.bf16.mxu0 %v1009_v53 }
  0x31   :  { %950 = vmatpush3.bf16.msra.mxu1 %v1019_v8 }
  0x32   :  { %951 = vmatprep.subr.bf16.mxu1 %v1032_v43 }
  0x33   :  { %918 = vmatpush3.bf16.msra.mxu0 %v1010_v54 }
  0x34   :  { %919 = vmatprep.subr.bf16.mxu0 %v1011_v55 }
  0x35   :  { %952 = vmatpush3.bf16.msra.mxu1 %v1020_v9 }
  0x36   :  { %953 = vmatprep.subr.bf16.mxu1 %v1032_v43 }
  0x37   :  { %920 = vmatpush3.bf16.msra.mxu0 %v1012_v59 }
  0x38   :  { %921 = vmatprep.subr.bf16.mxu0 %v1013_v63 }
  0x39   :  { %954 = vmatpush3.bf16.msra.mxu1 %v1021_v10 }
  0x3a   :  { %959 = vmatprep.subr.bf16.mxu1 %v1032_v43 }
  0x3b   :  { %922 = vmatpush3.bf16.msra.mxu0 %v1014_v1 }
  0x3c   :  { %923 = vmatprep.subr.bf16.mxu0 %v1015_v2 }
  0x3f   :  { %924 = vmatpush3.bf16.msra.mxu0 %v1016_v3 }
  0x42   :  { %566 = vmatmul.mubr.bf16.vlgmr.msra.gmra.mrb[4].mxu0 %v45_v6 }
  0xf5   :  { %v881_v11 = vpop.f32.mrb[0].mxu0 }
  0xf6   :  { %v882_v13 = vpop.f32.mrb[1].mxu0 }
  0xf7   :  { %v883_v14 = vadd.f32 %v882_v13, %v881_v11  ;;  %v884_v15 = vpop.f32.mrb[2].mxu0  ;;  %v903_v16 = vpop.f32.mrb[0].mxu1 }
  0xf8   :  { %v885_v17 = vpop.f32.mrb[3].mxu0  ;;  %v904_v20 = vpop.f32.mrb[1].mxu1 }
  0xf9   :  { %v486_v18 = vadd.f32 %v883_v14, %v804_v12  ;;  %v886_v19 = vadd.f32 %v885_v17, %v884_v15  ;;  %v905_v21 = vadd.f32 %v904_v20, %v903_v16  ;;  %v906_v22 = vpop.f32.mrb[2].mxu1 }
  0xfa   :  { %v907_v24 = vpop.f32.mrb[3].mxu1 }
  0xfb   :  { %v489_v23 = vadd.f32 %v886_v19, %v804_v12  ;;  %v527_v25 = vadd.f32 %v905_v21, %v486_v18  ;;  %v908_v26 = vadd.f32 %v907_v24, %v906_v22 }
  0xfd   :  { %v530_v27 = vadd.f32 %v908_v26, %v489_v23 }
  0xff   :  { %v608_v28 = vpop.f32.mrb[4].mxu1 }
 0x100   :  { %v945_v29 = vpop.f32.mrb[5].mxu1 }
 0x101   :  { %v611_v30 = vpop.f32.mrb[6].mxu1 }
 0x102   :  { %v946_v31 = vpop.f32.mrb[7].mxu1 }
 0x115   :  { %v925_v32 = vpop.f32.mrb[4].mxu0 }
 0x116   :  { %v926_v33 = vpop.f32.mrb[5].mxu0 }
 0x117   :  { %v927_v34 = vadd.f32 %v926_v33, %v925_v32  ;;  %v928_v35 = vpop.f32.mrb[6].mxu0 }
 0x118   :  { %v929_v36 = vpop.f32.mrb[7].mxu0 }
 0x119   :  { %v568_v37 = vadd.f32 %v927_v34, %v527_v25  ;;  %v930_v38 = vadd.f32 %v929_v36, %v928_v35 }
 0x11b   :  { %v609_v39 = vadd.f32 %v608_v28, %v568_v37  ;;  %v571_v40 = vadd.f32 %v930_v38, %v530_v27 }
 0x11d   :  { %v612_v41 = vadd.f32 %v611_v30, %v571_v40  ;;  %v615_v42 = vmax.f32 %v609_v39, 0.0 }
 0x11f   :  { %v616_v44 = vmax.f32 %v612_v41, 0.0 }
 0x121   :  { %v617_v45 = vpack.c.bf16 %v616_v44, %v615_v42 }
 0x123   :  { %956 = vmatmul.mubr.msk.bf16.vlgmr.msra.gmra.mrb[8].mxu1 %vm657_vm2, %v617_v45 }
 0x124   :  { %963 = vmatprep.mubr.msk.bf16.mxu1 %vm1033_vm0, %v1032_v43  ;;  %960 = vmatpush3.bf16.msra.mxu1 %v1022_v46 }
 0x125   :  { %961 = vmatprep.subr.bf16.mxu1 %v1032_v43  ;;  %v861_v43 = vld [vmem:[%s1321_s6] ss:$0 sm:$0xff] }
 0x128   :  { %962 = vmatpush3.bf16.msra.mxu1 %v1023_v47 }
 0x1f6   :  { %v695_v49 = vpop.f32.mrb[8].mxu1 }
 0x1f7   :  { %v696_v50 = vadd.f32 %v855_v48, %v695_v49  ;;  %v957_v51 = vpop.f32.mrb[9].mxu1 }
 0x1f8   :  { %v698_v52 = vpop.f32.mrb[10].mxu1 }
 0x1f9   :  { %v699_v53 = vadd.f32 %v855_v48, %v698_v52  ;;  %v958_v54 = vpop.f32.mrb[11].mxu1  ;;  %v702_v55 = vmax.f32 %v696_v50, 0.0 }
 0x1fb   :  { %v703_v56 = vmax.f32 %v699_v53, 0.0 }
 0x1fd   :  { %v704_v57 = vpack.c.bf16 %v703_v56, %v702_v55 }
 0x1ff   :  { %964 = vmatmul.mubr.msk.bf16.vlgmr.msra.gmra.mrb[12].mxu1 %vm728_vm3, %v704_v57 }
 0x2d2   :  { %v766_v58 = vpop.f32.mrb[12].mxu1 }
 0x2d3   :  { %v767_v59 = vadd.f32 %v861_v43, %v766_v58  ;;  %v965_v60 = vpop.f32.mrb[13].mxu1 }
 0x2d4   :  { %v769_v61 = vpop.f32.mrb[14].mxu1 }
 0x2d5   :  { %v770_v62 = vadd.f32 %v861_v43, %v769_v61  ;;  %v966_v63 = vpop.f32.mrb[15].mxu1  ;;  %v774_v0 = vsel %vm773_vm4, %v767_v59, -inf }
 0x2d6   :  { %775 = vmax.xlane.f32.xlu0 %v774_v0 }
 0x2d7   :  { %v777_v1 = vsel %vm773_vm4, %v770_v62, -inf }
 0x2da   :  { %778 = vmax.xlane.f32.xlu0 %v777_v1 }
 0x363   :  { %v776_v2 = vpop.xlane.xlu0 %775 }
 0x364   :  { %v780_v3 = vsub.f32 %v767_v59, %v776_v2 }
 0x366   :  { %v782_v4 = vmul.f32 1.442695, %v780_v3 }
 0x367   :  { %v779_v5 = vpop.xlane.xlu0 %778 }
 0x368   :  { %1024 = vpow2.f32 %v782_v4  ;;  %v781_v6 = vsub.f32 %v770_v62, %v779_v5 }
 0x36a   :  { %v784_v7 = vmul.f32 1.442695, %v781_v6 }
 0x36c   :  { %1026 = vpow2.f32 %v784_v7 }
 0x372   :  { %v1025_v8 = vpop.eup %1024 }
 0x373   :  { %v786_v9 = vsel %vm773_vm4, %v1025_v8, 0.0 }
 0x374   :  { %787 = vadd.xlane.f32.xlu1 %v786_v9 }
 0x376   :  { %v1027_v10 = vpop.eup %1026 }
 0x377   :  { %v789_v11 = vsel %vm773_vm4, %v1027_v10, 0.0 }
 0x378   :  { %790 = vadd.xlane.f32.xlu1 %v789_v11 }
 0x401   :  { %v788_v12 = vpop.xlane.xlu1 %787 }
 0x402   :  { %1028 = vlog2.f32 %v788_v12 }
 0x405   :  { %v791_v13 = vpop.xlane.xlu1 %790 }
 0x406   :  { %1030 = vlog2.f32 %v791_v13 }
 0x40c   :  { %v1029_v14 = vpop.eup %1028 }
 0x40d   :  { %v793_v15 = vmul.f32 0.6931472, %v1029_v14 }
 0x40f   :  { %v796_v16 = vsub.f32 %v780_v3, %v793_v15 }
 0x410   :  { %v1031_v17 = vpop.eup %1030 }
 0x411   :  { %798 = vst.msk [vmem:[%s1322_s7] sm:$0xff] %vm773_vm4, %v796_v16  ;;  %v795_v18 = vmul.f32 0.6931472, %v1031_v17 }
 0x413   :  { %v797_v19 = vsub.f32 %v781_v6, %v795_v18 }
 0x415   :  { %799 = vst.msk [vmem:[%s1322_s7 + $0x8] sm:$0xff] %vm773_vm4, %v797_v19 }

</bundles_post_ra>
